<compile_context>
chip_gen: v7x
topology: tpu7x:2x2x1
jax: 0.10.0
libtpu: 0.0.40
codegen_flags: <defaults>
</compile_context>

<pallas_src>
import functools

import jax
import jax.numpy as jnp
from jax import lax
from jax.experimental import pallas as pl
from jax.experimental.pallas import tpu as pltpu


def _sca_kernel(x_ref, w_ref, b_ref, o_ref, acc_ref, *, hw_total, thw, mask_hw):
    """One (batch-block, spatial-block) grid step.

    x_ref:   (TB, C, THW)  activations (caller dtype)
    w_ref:   (C, C)        1x1 conv weight, (in, out) layout, pre-scaled by 1/HW, f32
    b_ref:   (1, C)        conv bias, f32
    o_ref:   (TB, C)       output block (written on the last spatial step)
    acc_ref: (TB, C) f32   running spatial sum (scratch, resident across k)
    """
    k = pl.program_id(1)

    @pl.when(k == 0)
    def _init():
        acc_ref[...] = jnp.zeros_like(acc_ref)

    x = x_ref[...]
    if mask_hw:  # static: only traced when THW does not divide H*W
        lane = lax.broadcasted_iota(jnp.int32, x.shape, dimension=2)
        valid = (k * thw + lane) < hw_total
        x = jnp.where(valid, x, jnp.zeros_like(x))

    # Widen-into-reduce: f32 accumulation without materializing an f32 copy of
    # the whole activation block.
    acc_ref[...] += jnp.sum(x, axis=-1, dtype=jnp.float32)

    @pl.when(k == pl.num_programs(1) - 1)
    def _finalize():
        pooled = acc_ref[...]                                  # sum; 1/HW folded into W
        out = jnp.dot(pooled, w_ref[...],
                      preferred_element_type=jnp.float32)      # 1x1 conv == matmul (MXU)
        o_ref[...] = (out + b_ref[...]).astype(o_ref.dtype)


def simple_channel_attention(x_nchw, conv_weight, conv_bias, *,
                             target_block_bytes=2 * 1024 * 1024):
    """PyTorch-equivalent forward.

    x_nchw:      (N, dim, H, W)
    conv_weight: (dim, dim, 1, 1)   PyTorch Conv2d weight (out, in, 1, 1)
    conv_bias:   (dim,)
    returns:     (N, dim, 1, 1) float32
    """
    N, C, H, W = x_nchw.shape
    HW = H * W
    itemsize = x_nchw.dtype.itemsize

    # Contiguous (free) reshape: spatial reduction lands on the 128-lane axis.
    x = x_nchw.reshape(N, C, HW)

    # --- spatial tiling (reduction grid axis) --------------------------------
    # Full H*W per step when small; otherwise a multiple-of-128 tile near the
    # DMA sweet spot so VMEM stays bounded even for huge spatial extents.
    if HW <= 512 or C * HW * itemsize <= target_block_bytes:
        THW = HW
    else:
        THW = max(128, min(HW, (target_block_bytes // (C * itemsize)) // 128 * 128))
    mask_hw = (HW % THW) != 0
    num_k = pl.cdiv(HW, THW)

    # --- batch tiling (parallel grid axis) ------------------------------------
    per_sample_bytes = C * THW * itemsize
    tb = max(1, target_block_bytes // per_sample_bytes)
    if N >= 16:
        tb = min(tb, N // 2)            # keep >= 2 blocks so v7x can use both TCs
    if tb >= N or N <= 8:
        TB = N                          # single (full) batch block
    else:
        TB = max(8, (tb // 8) * 8)      # multiple of 8 -> legal (TB, C) out block
    num_b = pl.cdiv(N, TB)              # last block may read past N; rows discarded

    # PyTorch conv weight (out, in, 1, 1) -> (in, out) matrix with 1/HW folded in.
    w_mat = conv_weight.reshape(C, C).T.astype(jnp.float32) / float(HW)
    b_row = conv_bias.reshape(1, C).astype(jnp.float32)

    # VMEM budget: double-buffered activations + resident weight/bias + scratch.
    act_bytes = TB * C * THW * itemsize
    need = 2 * act_bytes + 2 * C * C * 4 + 4 * TB * C * 4 + 2 * C * 4
    vmem_limit = int(min(max(2 * need, 32 * 1024 * 1024), 56 * 1024 * 1024))

    kernel = functools.partial(_sca_kernel, hw_total=HW, thw=THW, mask_hw=mask_hw)

    out = pl.pallas_call(
        kernel,
        grid=(num_b, num_k),
        in_specs=[
            pl.BlockSpec((TB, C, THW), lambda b, k: (b, 0, k)),   # activations
            pl.BlockSpec((C, C), lambda b, k: (0, 0)),            # conv weight (resident)
            pl.BlockSpec((1, C), lambda b, k: (0, 0)),            # conv bias (resident)
        ],
        out_specs=pl.BlockSpec((TB, C), lambda b, k: (b, 0)),
        out_shape=jax.ShapeDtypeStruct((N, C), jnp.float32),
        scratch_shapes=[pltpu.VMEM((TB, C), jnp.float32)],
        compiler_params=pltpu.CompilerParams(
            dimension_semantics=("parallel", "arbitrary"),
            vmem_limit_bytes=vmem_limit),
        cost_estimate=pl.CostEstimate(
            flops=int(N * C * HW + 2 * N * C * C),
            transcendentals=0,
            bytes_accessed=int(N * C * HW * itemsize + C * C * 4 + C * 4 + N * C * 4)),
    )(x, w_mat, b_row)

    return out.reshape(N, C, 1, 1)


def reference(x_nchw, conv_weight, conv_bias):
    """Pure-JAX reference matching the PyTorch module."""
    N, C, H, W = x_nchw.shape
    pooled = jnp.mean(x_nchw.astype(jnp.float32), axis=(2, 3))           # (N, C)
    out = pooled @ conv_weight.reshape(C, C).T.astype(jnp.float32)
    return (out + conv_bias.astype(jnp.float32)[None, :]).reshape(N, C, 1, 1)


if __name__ == "__main__":
    dim = 4
    N, H, W = 2, 16, 16

    key = jax.random.PRNGKey(0)
    kx, kw, kb = jax.random.split(key, 3)

    x = jax.random.normal(kx, (N, dim, H, W), jnp.float32)               # NCHW like PyTorch
    # Conv2d(dim, dim, kernel_size=1) parameters (deterministic random init).
    fan_in = float(dim)
    bound = 1.0 / (fan_in ** 0.5)
    conv_weight = jax.random.uniform(kw, (dim, dim, 1, 1), jnp.float32,
                                     minval=-bound, maxval=bound)
    conv_bias = jax.random.uniform(kb, (dim,), jnp.float32,
                                   minval=-bound, maxval=bound)

    out = jax.block_until_ready(simple_channel_attention(x, conv_weight, conv_bias))
    ref = jax.block_until_ready(reference(x, conv_weight, conv_bias))
    assert out.shape == (N, dim, 1, 1)
    if not jnp.allclose(out, ref, atol=1e-5, rtol=1e-5):
        raise AssertionError("Pallas kernel output does not match JAX reference")

    # Extra sanity checks for the multi-step spatial reduction path and the
    # masked (H*W not a multiple of the tile) path, using a tiny block budget.
    for (n2, h2, w2) in [(2, 32, 32), (2, 27, 27)]:
        x2 = jax.random.normal(jax.random.PRNGKey(1), (n2, dim, h2, w2), jnp.float32)
        o2 = jax.block_until_ready(
            simple_channel_attention(x2, conv_weight, conv_bias,
                                     target_block_bytes=2048))
        r2 = jax.block_until_ready(reference(x2, conv_weight, conv_bias))
        if not jnp.allclose(o2, r2, atol=1e-5, rtol=1e-5):
            raise AssertionError("Pallas kernel mismatch on tiled-H*W path")

    print("KERNEL_OK")
</pallas_src>

<mosaic_0001>
module attributes {stable_mosaic.version = 11 : i64} {
  func.func @_sca_kernel(%arg0: i32, %arg1: i32, %arg2: memref<2x4x256xf32, #tpu.memory_space<vmem>>, %arg3: memref<4x4xf32, #tpu.memory_space<vmem>>, %arg4: memref<1x4xf32, #tpu.memory_space<vmem>>, %arg5: memref<2x4xf32, #tpu.memory_space<vmem>>, %arg6: memref<2x4xf32, #tpu.memory_space<vmem>>) attributes {dimension_semantics = [#tpu.dimension_semantics<parallel>, #tpu.dimension_semantics<arbitrary>], iteration_bounds = array<i64: 1, 1>, scalar_prefetch = 0 : i64, scratch_operands = 1 : i64, tpu.core_type = #tpu.core_type<tc>, window_params = [{transform_indices = @transform_0, window_bounds = array<i64: 2, 4, 256>}, {pipeline_mode = #tpu.pipeline_mode<synchronous>, transform_indices = @transform_1, window_bounds = array<i64: 4, 4>}, {pipeline_mode = #tpu.pipeline_mode<synchronous>, transform_indices = @transform_2, window_bounds = array<i64: 1, 4>}, {transform_indices = @transform_3, window_bounds = array<i64: 2, 4>}]} {
    %c0_i32 = arith.constant 0 : i32
    %0 = arith.cmpi eq, %arg1, %c0_i32 : i32
    %1 = arith.extui %0 : i1 to i32
    %c0_i32_0 = arith.constant 0 : i32
    %2 = arith.cmpi ne, %1, %c0_i32_0 : i32
    scf.if %2 {
      %cst_9 = arith.constant 0.000000e+00 : f32
      %11 = vector.broadcast %cst_9 : f32 to vector<2x4xf32>
      %c0_10 = arith.constant 0 : index
      %c0_11 = arith.constant 0 : index
      %12 = vector.load %arg6[%c0_10, %c0_11] : memref<2x4xf32, #tpu.memory_space<vmem>>, vector<2x4xf32>
      tpu.vector_store %arg6[%c0_10, %c0_11], %11 {strides = array<i32>} : memref<2x4xf32, #tpu.memory_space<vmem>>, vector<2x4xf32>,
    } else {
    }
    %c0 = arith.constant 0 : index
    %c0_1 = arith.constant 0 : index
    %c0_2 = arith.constant 0 : index
    %3 = vector.load %arg2[%c0, %c0_1, %c0_2] : memref<2x4x256xf32, #tpu.memory_space<vmem>>, vector<2x4x256xf32>
    %c0_3 = arith.constant 0 : index
    %c0_4 = arith.constant 0 : index
    %4 = vector.load %arg6[%c0_3, %c0_4] : memref<2x4xf32, #tpu.memory_space<vmem>>, vector<2x4xf32>
    %cst = arith.constant dense<0.000000e+00> : vector<2x4xf32>
    %5 = vector.multi_reduction <add>, %3, %cst [2] : vector<2x4x256xf32> to vector<2x4xf32>
    %6 = arith.addf %4, %5 : vector<2x4xf32>
    %c0_5 = arith.constant 0 : index
    %c0_6 = arith.constant 0 : index
    %7 = vector.load %arg6[%c0_5, %c0_6] : memref<2x4xf32, #tpu.memory_space<vmem>>, vector<2x4xf32>
    tpu.vector_store %arg6[%c0_5, %c0_6], %6 {strides = array<i32>} : memref<2x4xf32, #tpu.memory_space<vmem>>, vector<2x4xf32>,
    %c0_i32_7 = arith.constant 0 : i32
    %8 = arith.cmpi eq, %arg1, %c0_i32_7 : i32
    %9 = arith.extui %8 : i1 to i32
    %c0_i32_8 = arith.constant 0 : i32
    %10 = arith.cmpi ne, %9, %c0_i32_8 : i32
    scf.if %10 {
      %c0_9 = arith.constant 0 : index
      %c0_10 = arith.constant 0 : index
      %11 = vector.load %arg6[%c0_9, %c0_10] : memref<2x4xf32, #tpu.memory_space<vmem>>, vector<2x4xf32>
      %c0_11 = arith.constant 0 : index
      %c0_12 = arith.constant 0 : index
      %12 = vector.load %arg3[%c0_11, %c0_12] : memref<4x4xf32, #tpu.memory_space<vmem>>, vector<4x4xf32>
      %cst_13 = arith.constant dense<0.000000e+00> : vector<2x4xf32>
      %13 = tpu.matmul %11, %12, %cst_13 {dimension_numbers = #tpu.dot_dimension_numbers<[1], [0], [0], [1], [0, 0, 1, 1], [], []>} : vector<2x4xf32>, vector<4x4xf32>, vector<2x4xf32> -> vector<2x4xf32>
      %c0_14 = arith.constant 0 : index
      %c0_15 = arith.constant 0 : index
      %14 = vector.load %arg4[%c0_14, %c0_15] : memref<1x4xf32, #tpu.memory_space<vmem>>, vector<1x4xf32>
      %15 = vector.broadcast %14 : vector<1x4xf32> to vector<2x4xf32>
      %16 = arith.addf %13, %15 : vector<2x4xf32>
      %c0_16 = arith.constant 0 : index
      %c0_17 = arith.constant 0 : index
      %17 = vector.load %arg5[%c0_16, %c0_17] : memref<2x4xf32, #tpu.memory_space<vmem>>, vector<2x4xf32>
      tpu.vector_store %arg5[%c0_16, %c0_17], %16 {strides = array<i32>} : memref<2x4xf32, #tpu.memory_space<vmem>>, vector<2x4xf32>,
    } else {
    }
    return
  }
  func.func @transform_0(%arg0: i32, %arg1: i32) -> (i32, i32, i32) {
    %c0_i32 = arith.constant 0 : i32
    %c0_i32_0 = arith.constant 0 : i32
    return %arg0, %c0_i32, %arg1 : i32, i32, i32
  }
  func.func @transform_1(%arg0: i32, %arg1: i32) -> (i32, i32) {
    %c0_i32 = arith.constant 0 : i32
    %c0_i32_0 = arith.constant 0 : i32
    %c0_i32_1 = arith.constant 0 : i32
    return %c0_i32, %c0_i32_0 : i32, i32
  }
  func.func @transform_2(%arg0: i32, %arg1: i32) -> (i32, i32) {
    %c0_i32 = arith.constant 0 : i32
    %c0_i32_0 = arith.constant 0 : i32
    %c0_i32_1 = arith.constant 0 : i32
    return %c0_i32, %c0_i32_0 : i32, i32
  }
  func.func @transform_3(%arg0: i32, %arg1: i32) -> (i32, i32) {
    %c0_i32 = arith.constant 0 : i32
    %c0_i32_0 = arith.constant 0 : i32
    return %arg0, %c0_i32 : i32, i32
  }
}

</mosaic_0001>

<bundles_post_ra>
// kernel: tpu_custom_call.1
= control target key start
LH: loop header
LB: loop body
LE: loop exit
PB: predicated region body
PF: predicated region fallthrough
CT: control target
= control target key end

     0   :  { %8 = vsyncpa [#allocation4], 0  ;;  %s356_s0 = inlined_call_operand.hbm [shape: f32[2,4,256], index: 0, kind: input, shape index: {}]   ;;  %s357_s1 = inlined_call_operand.hbm [shape: f32[4,4], index: 1, kind: input, shape index: {}]   ;;  %s358_s2 = inlined_call_operand.vmem [shape: f32[1,4], index: 2, kind: input, shape index: {}]   ;;  %s359_s3 = inlined_call_operand.hbm [shape: f32[2,4], index: 3, kind: output, shape index: {}]  }
   0x1   :  { %9 = vsyncpa [#allocation7], 0 }
   0x2   :  { %10 = vsyncpa [#allocation5], 0  ;;  %s282_s12 = smov [#allocation3]   ;;  %s210_s16 = scalar_lea.hbm %s356_s0, 256 }
   0x3   :  { %s16_s13 = sshll.u32 %s282_s12, 4  ;;  %p211_p0 = scmp.ne.s32.totalorder %s356_s0, %s210_s16  ;;  %s17_s13 = int_to_ptr.vmem [resolvable:$true] %s16_s13 }
   0x4   :  { %p214_p1 = scmp.lt.u32.totalorder %s210_s16, %s356_s0 }
   0x6   :  { %p216_p2 = pnand %p214_p1, %p211_p0 }
   0x8   :  { %219 = shalt.err (!%p216_p2)
}
   0x9   :  { %s220_s21 = scalar_lea.vmem %s17_s13, 256  ;;  %p225_p4 = scmp.lt.s32.totalorder %s17_s13, %s17_s13 }
   0xa   :  { %p221_p3 = scmp.ne.s32.totalorder %s17_s13, %s220_s21  ;;  %p226_p5 = scmp.lt.s32.totalorder %s220_s21, %s220_s21 }
   0xc   :  { %p227_p6 = por %p226_p5, %p225_p4 }
   0xe   :  { %p228_p7 = pnand %p227_p6, %p221_p3 }
  0x10   :  { %231 = shalt.err (!%p228_p7)
}
  0x11   :  { %s283_s22 = smov 128   ;;  %s284_s23 = smov 8  }
  0x12   :  { %22 = dma.hbm_to_vmem [thread:$0]  %s356_s0, 256, %s17_s13, [#allocation4], %s283_s22, %s283_s22, %s284_s23  }
  0x13   :  { %s285_s26 = smov [#allocation6]   ;;  %s232_s30 = scalar_lea.hbm %s357_s1, 64 }
  0x14   :  { %s29_s27 = sshll.u32 %s285_s26, 4  ;;  %p233_p8 = scmp.ne.s32.totalorder %s357_s1, %s232_s30  ;;  %s30_s27 = int_to_ptr.vmem [resolvable:$true] %s29_s27 }
  0x15   :  { %p236_p9 = scmp.lt.u32.totalorder %s232_s30, %s357_s1 }
  0x17   :  { %p238_p10 = pnand %p236_p9, %p233_p8 }
  0x19   :  { %241 = shalt.err (!%p238_p10)
}
  0x1a   :  { %s242_s8 = scalar_lea.vmem %s30_s27, 64  ;;  %p247_p12 = scmp.lt.s32.totalorder %s30_s27, %s30_s27 }
  0x1b   :  { %p243_p11 = scmp.ne.s32.totalorder %s30_s27, %s242_s8  ;;  %p248_p13 = scmp.lt.s32.totalorder %s242_s8, %s242_s8 }
  0x1d   :  { %p249_p0 = por %p248_p13, %p247_p12 }
  0x1f   :  { %p250_p1 = pnand %p249_p0, %p243_p11 }
  0x21   :  { %253 = shalt.err (!%p250_p1)
}
  0x22   :  { %32 = dma.hbm_to_vmem [thread:$0]  %s357_s1, 64, %s30_s27, [#allocation7]  }
  0x23   :  { %276 = dma.done.wait [#allocation4], 256  }
  0x24   :  { %277 = vsyncadd [#allocation4], 4294967040 }
  0x25   :  { %278 = dma.done.wait [#allocation7], 64  }
  0x26   :  { %279 = vsyncadd [#allocation7], 4294967232  ;;  %vm56_vm0 = vcmask 1043456   ;;  %v47_v0 = vld [vmem:[#allocation3] sm:$0xff]  ;;  %v48_v1 = vld [vmem:[#allocation3 + $0x8] sm:$0xff]  ;;  %vm45_vm1 = vcmask 25600   ;;  %v69_v12 = vlaneseq }
  0x27   :  { %v52_v2 = vcombine.high %v47_v0, %v47_v0  ;;  %v57_v3 = vsel %vm56_vm0, %v47_v0, 0.0  ;;  %v53_v4 = vcombine.high %v48_v1, %v48_v1  ;;  %v62_v6 = vsel %vm56_vm0, %v48_v1, 0.0  ;;  %v89_v11 = vld [vmem:[#allocation6] sm:$0xf]  ;;  %v191_v24 = vld [vmem:[%s358_s2] ss:$0 sm:$0xff] }
  0x28   :  { %v286_v10 = vmov 0.0   ;;  %vm287_vm2 = vmmov 0   ;;  %v70_v13 = vand.u32 127, %v69_v12  ;;  %v72_v14 = vshrl.u32 %v69_v12, 7  ;;  %s288_s11 = smov [#allocation8]  }
  0x29   :  { %v58_v5 = vsel %vm56_vm0, %v52_v2, 0.0  ;;  %v63_v7 = vsel %vm56_vm0, %v53_v4, 0.0  ;;  %46 = vst.msk [vmem:[#allocation2] sm:$0x3] %vm45_vm1, %v286_v10  ;;  %196 = vmatprep.subr.mxu0 %v286_v10  ;;  %198 = vmatprep.mubr.msk.f32.mxu0 %vm287_vm2, %v286_v10  ;;  %vm79_vm3 = vcmask 1041409   ;;  %vm97_vm4 = vcmask 31744  }
  0x2a   :  { %v59_v8 = vadd.f32 %v58_v5, %v57_v3  ;;  %v64_v9 = vadd.f32 %v63_v7, %v62_v6  ;;  %197 = vmatpush3.msk.msra.mxu0 %vm56_vm0, %v89_v11  ;;  %v73_v16 = vsub.s32 %v70_v13, %v72_v14  ;;  %s181_s12 = sshll.u32 %s288_s11, 4  ;;  %s182_s12 = int_to_ptr.vmem [resolvable:$true] %s181_s12 }
  0x2b   :  { %s254_s13 = scalar_lea.vmem %s182_s12, 32  ;;  %p259_p3 = scmp.lt.s32.totalorder %s182_s12, %s182_s12 }
  0x2c   :  { %60 = vadd.xlane.f32.xlu0 %v59_v8  ;;  %p255_p2 = scmp.ne.s32.totalorder %s182_s12, %s254_s13  ;;  %p260_p4 = scmp.lt.s32.totalorder %s254_s13, %s254_s13 }
  0x2e   :  { %p261_p5 = por %p260_p4, %p259_p3 }
  0x30   :  { %65 = vadd.xlane.f32.xlu0 %v64_v9  ;;  %v49_v20 = vld [vmem:[#allocation2] sm:$0x3]  ;;  %p262_p6 = pnand %p261_p5, %p255_p2 }
  0xb9   :  { %v61_v15 = vpop.xlane.xlu0 %60 }
  0xba   :  { %v74_v18 = vrot.slane %v61_v15, %v73_v16 }
  0xbd   :  { %v66_v17 = vpop.xlane.xlu0 %65 }
  0xbe   :  { %v78_v19 = vrot.slane %v66_v17, %v73_v16 }
  0xc0   :  { %v80_v21 = vsel %vm79_vm3, %v78_v19, %v74_v18 }
  0xc1   :  { %v82_v22 = vadd.f32 %v80_v21, %v49_v20 }
  0xc3   :  { %84 = vst.msk [vmem:[#allocation2] sm:$0x3] %vm45_vm1, %v82_v22 }
  0xca   :  { %v88_v23 = vld [vmem:[#allocation2] sm:$0x3] }
  0xcb   :  { %199 = vmatmul.mubr.msk.f32.vlgmr.msra.gmra.mrb[0].mxu0 %vm97_vm4, %v88_v23 }
 0x19e   :  { %v170_v25 = vpop.f32.mrb[0].mxu0 }
 0x19f   :  { %v171_v26 = vadd.f32 %v191_v24, %v170_v25  ;;  %v200_v27 = vpop.f32.mrb[1].mxu0 }
 0x1a1   :  { %174 = vst.msk [vmem:[#allocation8] sm:$0x3] %vm45_vm1, %v171_v26 }
 0x1a2   :  { %265 = shalt.err (!%p262_p6)
}
 0x1a3   :  { %s266_s16 = scalar_lea.hbm %s359_s3, 32 }
 0x1a4   :  { %p267_p7 = scmp.ne.s32.totalorder %s359_s3, %s266_s16  ;;  %p270_p8 = scmp.lt.u32.totalorder %s266_s16, %s359_s3 }
 0x1a6   :  { %p272_p9 = pnand %p270_p8, %p267_p7 }
 0x1a8   :  { %275 = shalt.err (!%p272_p9)
}
 0x1a9   :  { %184 = dma.vmem_to_hbm [thread:$0]  %s182_s12, 32, %s359_s3, [#allocation5]  }
 0x1aa   :  { %280 = dma.done.wait [#allocation5], 32  }
 0x1ab   :  { %281 = vsyncadd [#allocation5], 4294967264 }
 0x1ac   :  { %188 = vsyncpa [#allocation4], 1 }
 0x1ad   :  { %189 = vsyncpa [#allocation7], 1 }
 0x1ae   :  { %190 = vsyncpa [#allocation5], 1 }

</bundles_post_ra>
